<compile_context>
chip_gen: v5e
topology: v5e:2x2
jax: 0.10.0
libtpu: 0.0.40
codegen_flags: <defaults>
</compile_context>

<pallas_src>
import jax
import jax.numpy as jnp
from jax import lax
from jax.experimental import pallas as pl
from jax.experimental.pallas import tpu as pltpu


def _sigmoid(z):
    # Exact f32 sigmoid; exp goes to the EUP (separate VLIW slot).
    return 1.0 / (1.0 + jnp.exp(-z))


def _linear_t(x, w_ref, b_ref):
    # x @ W^T + b with W kept in PyTorch (out, in) layout: contraction on
    # axis 1 of BOTH operands -> MXU handles the transposed RHS natively,
    # no wrapper-side transpose / extra HBM copy.
    dn = (((1,), (1,)), ((), ()))
    return lax.dot_general(x, w_ref[...], dn,
                           preferred_element_type=jnp.float32) + b_ref[...]


def _rencoder_kernel(x_ref, w1_ref, b1_ref, w2_ref, b2_ref, w3_ref, b3_ref,
                     out_ref):
    x = x_ref[...].astype(jnp.float32)               # (tm, in_dim)
    h1 = _sigmoid(_linear_t(x, w1_ref, b1_ref))      # (tm, l1)
    h2 = _sigmoid(_linear_t(h1, w2_ref, b2_ref))     # (tm, l2)
    out_ref[...] = _linear_t(h2, w3_ref, b3_ref).astype(out_ref.dtype)


def _pick_batch_tile(B):
    """Largest tile (multiple of 8) dividing B, capped at 2048 rows.

    For small batches the whole array is one block (full-dim rule), which
    avoids per-grid-step overhead entirely."""
    if B <= 2048:
        return B
    for cand in (2048, 1024, 512, 256, 128, 64, 32, 16, 8):
        if B % cand == 0:
            return cand
    return B  # odd batch: single block (block_shape == full dim is legal)


def rencoder_forward(x, w1, b1, w2, b2, w3, b3):
    """REncoder forward: l3(sigmoid(l2(sigmoid(l1(x))))).

    x: (B, in_dim); w_k: (out_k, in_k) PyTorch layout; b_k: (out_k,).
    Returns (B, out_dim)."""
    B, in_dim = x.shape
    l1 = w1.shape[0]
    l2 = w2.shape[0]
    out_dim = w3.shape[0]

    tm = _pick_batch_tile(B)
    grid = (B // tm,)

    # Biases as (1, n) rows (metadata-only reshape; broadcast inside kernel).
    b1r = b1.reshape(1, l1)
    b2r = b2.reshape(1, l2)
    b3r = b3.reshape(1, out_dim)

    # Weights / biases are resident: same block index for every grid step.
    resident = lambda shape: pl.BlockSpec(shape, lambda i: (0, 0))

    flops = 2 * B * (in_dim * l1 + l1 * l2 + l2 * out_dim)
    transcendentals = B * (l1 + l2)                   # one exp per sigmoid
    bytes_accessed = 4 * (x.size + w1.size + b1.size + w2.size + b2.size
                          + w3.size + b3.size + B * out_dim)

    out = pl.pallas_call(
        _rencoder_kernel,
        out_shape=jax.ShapeDtypeStruct((B, out_dim), x.dtype),
        grid_spec=pltpu.PrefetchScalarGridSpec(
            num_scalar_prefetch=0,
            grid=grid,
            in_specs=[
                pl.BlockSpec((tm, in_dim), lambda i: (i, 0)),     # x (batch-tiled)
                resident((l1, in_dim)), resident((1, l1)),        # l1 params
                resident((l2, l1)),     resident((1, l2)),        # l2 params
                resident((out_dim, l2)), resident((1, out_dim)),  # l3 params
            ],
            out_specs=pl.BlockSpec((tm, out_dim), lambda i: (i, 0)),
        ),
        compiler_params=pltpu.CompilerParams(
            dimension_semantics=("parallel",)),        # megacore-shardable axis
        cost_estimate=pl.CostEstimate(
            flops=flops,
            transcendentals=transcendentals,
            bytes_accessed=bytes_accessed),
    )(x, w1, b1r, w2, b2r, w3, b3r)
    return out


if __name__ == "__main__":
    key = jax.random.PRNGKey(0)
    kx, kw1, kb1, kw2, kb2, kw3, kb3 = jax.random.split(key, 7)

    # Small shapes consistent with the module: (x_i, y_i) pairs -> in_dim=3,
    # hidden sizes fixed at 4 by the module, representation out_dim=8.
    batch, in_dim, out_dim = 16, 3, 8
    l1_size = l2_size = 4

    x = jax.random.normal(kx, (batch, in_dim), dtype=jnp.float32)

    # init_func = torch.nn.init.normal_ on weights; PyTorch-default uniform
    # (+/- 1/sqrt(fan_in)) on biases.
    w1 = jax.random.normal(kw1, (l1_size, in_dim), dtype=jnp.float32)
    w2 = jax.random.normal(kw2, (l2_size, l1_size), dtype=jnp.float32)
    w3 = jax.random.normal(kw3, (out_dim, l2_size), dtype=jnp.float32)

    def _bias(k, n, fan_in):
        bound = 1.0 / jnp.sqrt(jnp.float32(fan_in))
        return jax.random.uniform(k, (n,), minval=-bound, maxval=bound,
                                  dtype=jnp.float32)

    b1 = _bias(kb1, l1_size, in_dim)
    b2 = _bias(kb2, l2_size, l1_size)
    b3 = _bias(kb3, out_dim, l2_size)

    out = rencoder_forward(x, w1, b1, w2, b2, w3, b3)
    jax.block_until_ready(out)

    # Plain-JAX reference (same math as the PyTorch module).
    sig = lambda z: 1.0 / (1.0 + jnp.exp(-z))
    h1 = sig(x @ w1.T + b1)
    h2 = sig(h1 @ w2.T + b2)
    ref = h2 @ w3.T + b3
    assert jnp.allclose(out, ref, atol=1e-5, rtol=1e-5)

    print("KERNEL_OK")
</pallas_src>

<mosaic_0001>
module attributes {stable_mosaic.version = 11 : i64} {
  func.func @_rencoder_kernel(%arg0: i32, %arg1: memref<16x3xf32, #tpu.memory_space<vmem>>, %arg2: memref<4x3xf32, #tpu.memory_space<vmem>>, %arg3: memref<1x4xf32, #tpu.memory_space<vmem>>, %arg4: memref<4x4xf32, #tpu.memory_space<vmem>>, %arg5: memref<1x4xf32, #tpu.memory_space<vmem>>, %arg6: memref<8x4xf32, #tpu.memory_space<vmem>>, %arg7: memref<1x8xf32, #tpu.memory_space<vmem>>, %arg8: memref<16x8xf32, #tpu.memory_space<vmem>>) attributes {dimension_semantics = [#tpu.dimension_semantics<parallel>], iteration_bounds = array<i64: 1>, scalar_prefetch = 0 : i64, scratch_operands = 0 : i64, tpu.core_type = #tpu.core_type<tc>, window_params = [{transform_indices = @transform_0, window_bounds = array<i64: 16, 3>}, {pipeline_mode = #tpu.pipeline_mode<synchronous>, transform_indices = @transform_1, window_bounds = array<i64: 4, 3>}, {pipeline_mode = #tpu.pipeline_mode<synchronous>, transform_indices = @transform_2, window_bounds = array<i64: 1, 4>}, {pipeline_mode = #tpu.pipeline_mode<synchronous>, transform_indices = @transform_3, window_bounds = array<i64: 4, 4>}, {pipeline_mode = #tpu.pipeline_mode<synchronous>, transform_indices = @transform_4, window_bounds = array<i64: 1, 4>}, {pipeline_mode = #tpu.pipeline_mode<synchronous>, transform_indices = @transform_5, window_bounds = array<i64: 8, 4>}, {pipeline_mode = #tpu.pipeline_mode<synchronous>, transform_indices = @transform_6, window_bounds = array<i64: 1, 8>}, {transform_indices = @transform_7, window_bounds = array<i64: 16, 8>}]} {
    %c0 = arith.constant 0 : index
    %c0_0 = arith.constant 0 : index
    %0 = vector.load %arg1[%c0, %c0_0] : memref<16x3xf32, #tpu.memory_space<vmem>>, vector<16x3xf32>
    %c0_1 = arith.constant 0 : index
    %c0_2 = arith.constant 0 : index
    %1 = vector.load %arg2[%c0_1, %c0_2] : memref<4x3xf32, #tpu.memory_space<vmem>>, vector<4x3xf32>
    %cst = arith.constant dense<0.000000e+00> : vector<16x4xf32>
    %2 = tpu.matmul %0, %1, %cst {dimension_numbers = #tpu.dot_dimension_numbers<[1], [1], [0], [0], [0, 0, 1, 0], [], []>} : vector<16x3xf32>, vector<4x3xf32>, vector<16x4xf32> -> vector<16x4xf32>
    %c0_3 = arith.constant 0 : index
    %c0_4 = arith.constant 0 : index
    %3 = vector.load %arg3[%c0_3, %c0_4] : memref<1x4xf32, #tpu.memory_space<vmem>>, vector<1x4xf32>
    %4 = vector.broadcast %3 : vector<1x4xf32> to vector<16x4xf32>
    %5 = arith.addf %2, %4 : vector<16x4xf32>
    %cst_5 = arith.constant 0.000000e+00 : f32
    %6 = vector.broadcast %cst_5 : f32 to vector<16x4xf32>
    %7 = arith.subf %6, %5 : vector<16x4xf32>
    %8 = math.exp %7 : vector<16x4xf32>
    %cst_6 = arith.constant 1.000000e+00 : f32
    %9 = vector.broadcast %cst_6 : f32 to vector<16x4xf32>
    %10 = arith.addf %9, %8 : vector<16x4xf32>
    %cst_7 = arith.constant 1.000000e+00 : f32
    %11 = vector.broadcast %cst_7 : f32 to vector<16x4xf32>
    %12 = arith.divf %11, %10 : vector<16x4xf32>
    %c0_8 = arith.constant 0 : index
    %c0_9 = arith.constant 0 : index
    %13 = vector.load %arg4[%c0_8, %c0_9] : memref<4x4xf32, #tpu.memory_space<vmem>>, vector<4x4xf32>
    %cst_10 = arith.constant dense<0.000000e+00> : vector<16x4xf32>
    %14 = tpu.matmul %12, %13, %cst_10 {dimension_numbers = #tpu.dot_dimension_numbers<[1], [1], [0], [0], [0, 0, 1, 0], [], []>} : vector<16x4xf32>, vector<4x4xf32>, vector<16x4xf32> -> vector<16x4xf32>
    %c0_11 = arith.constant 0 : index
    %c0_12 = arith.constant 0 : index
    %15 = vector.load %arg5[%c0_11, %c0_12] : memref<1x4xf32, #tpu.memory_space<vmem>>, vector<1x4xf32>
    %16 = vector.broadcast %15 : vector<1x4xf32> to vector<16x4xf32>
    %17 = arith.addf %14, %16 : vector<16x4xf32>
    %cst_13 = arith.constant 0.000000e+00 : f32
    %18 = vector.broadcast %cst_13 : f32 to vector<16x4xf32>
    %19 = arith.subf %18, %17 : vector<16x4xf32>
    %20 = math.exp %19 : vector<16x4xf32>
    %cst_14 = arith.constant 1.000000e+00 : f32
    %21 = vector.broadcast %cst_14 : f32 to vector<16x4xf32>
    %22 = arith.addf %21, %20 : vector<16x4xf32>
    %cst_15 = arith.constant 1.000000e+00 : f32
    %23 = vector.broadcast %cst_15 : f32 to vector<16x4xf32>
    %24 = arith.divf %23, %22 : vector<16x4xf32>
    %c0_16 = arith.constant 0 : index
    %c0_17 = arith.constant 0 : index
    %25 = vector.load %arg6[%c0_16, %c0_17] : memref<8x4xf32, #tpu.memory_space<vmem>>, vector<8x4xf32>
    %cst_18 = arith.constant dense<0.000000e+00> : vector<16x8xf32>
    %26 = tpu.matmul %24, %25, %cst_18 {dimension_numbers = #tpu.dot_dimension_numbers<[1], [1], [0], [0], [0, 0, 1, 0], [], []>} : vector<16x4xf32>, vector<8x4xf32>, vector<16x8xf32> -> vector<16x8xf32>
    %c0_19 = arith.constant 0 : index
    %c0_20 = arith.constant 0 : index
    %27 = vector.load %arg7[%c0_19, %c0_20] : memref<1x8xf32, #tpu.memory_space<vmem>>, vector<1x8xf32>
    %28 = vector.broadcast %27 : vector<1x8xf32> to vector<16x8xf32>
    %29 = arith.addf %26, %28 : vector<16x8xf32>
    %c0_21 = arith.constant 0 : index
    %c0_22 = arith.constant 0 : index
    %30 = vector.load %arg8[%c0_21, %c0_22] : memref<16x8xf32, #tpu.memory_space<vmem>>, vector<16x8xf32>
    tpu.vector_store %arg8[%c0_21, %c0_22], %29 {strides = array<i32>} : memref<16x8xf32, #tpu.memory_space<vmem>>, vector<16x8xf32>,
    return
  }
  func.func @transform_0(%arg0: i32) -> (i32, i32) {
    %c0_i32 = arith.constant 0 : i32
    %c0_i32_0 = arith.constant 0 : i32
    return %arg0, %c0_i32 : i32, i32
  }
  func.func @transform_1(%arg0: i32) -> (i32, i32) {
    %c0_i32 = arith.constant 0 : i32
    %c0_i32_0 = arith.constant 0 : i32
    %c0_i32_1 = arith.constant 0 : i32
    return %c0_i32, %c0_i32_0 : i32, i32
  }
  func.func @transform_2(%arg0: i32) -> (i32, i32) {
    %c0_i32 = arith.constant 0 : i32
    %c0_i32_0 = arith.constant 0 : i32
    %c0_i32_1 = arith.constant 0 : i32
    return %c0_i32, %c0_i32_0 : i32, i32
  }
  func.func @transform_3(%arg0: i32) -> (i32, i32) {
    %c0_i32 = arith.constant 0 : i32
    %c0_i32_0 = arith.constant 0 : i32
    %c0_i32_1 = arith.constant 0 : i32
    return %c0_i32, %c0_i32_0 : i32, i32
  }
  func.func @transform_4(%arg0: i32) -> (i32, i32) {
    %c0_i32 = arith.constant 0 : i32
    %c0_i32_0 = arith.constant 0 : i32
    %c0_i32_1 = arith.constant 0 : i32
    return %c0_i32, %c0_i32_0 : i32, i32
  }
  func.func @transform_5(%arg0: i32) -> (i32, i32) {
    %c0_i32 = arith.constant 0 : i32
    %c0_i32_0 = arith.constant 0 : i32
    %c0_i32_1 = arith.constant 0 : i32
    return %c0_i32, %c0_i32_0 : i32, i32
  }
  func.func @transform_6(%arg0: i32) -> (i32, i32) {
    %c0_i32 = arith.constant 0 : i32
    %c0_i32_0 = arith.constant 0 : i32
    %c0_i32_1 = arith.constant 0 : i32
    return %c0_i32, %c0_i32_0 : i32, i32
  }
  func.func @transform_7(%arg0: i32) -> (i32, i32) {
    %c0_i32 = arith.constant 0 : i32
    %c0_i32_0 = arith.constant 0 : i32
    return %arg0, %c0_i32 : i32, i32
  }
}

</mosaic_0001>

<bundles_post_ra>
// kernel: tpu_custom_call.1
= control target key start
LH: loop header
LB: loop body
LE: loop exit
PB: predicated region body
PF: predicated region fallthrough
CT: control target
= control target key end

     0   :  { %vm33_vm0 = vcmask 23552   ;;  %vm109_vm1 = vcmask 31744   ;;  %s329_s1 = inlined_call_operand.vmem [shape: f32[4,3], index: 1, kind: input, shape index: {}]   ;;  %s330_s0 = inlined_call_operand.vmem [shape: f32[16,3], index: 0, kind: input, shape index: {}]   ;;  %s331_s2 = inlined_call_operand.vmem [shape: f32[1,4], index: 2, kind: input, shape index: {}]   ;;  %s332_s4 = inlined_call_operand.vmem [shape: f32[1,4], index: 4, kind: input, shape index: {}]   ;;  %s333_s3 = inlined_call_operand.vmem [shape: f32[4,4], index: 3, kind: input, shape index: {}]   ;;  %s334_s6 = inlined_call_operand.vmem [shape: f32[1,8], index: 6, kind: input, shape index: {}]   ;;  %s335_s5 = inlined_call_operand.vmem [shape: f32[8,4], index: 5, kind: input, shape index: {}]   ;;  %s336_s7 = inlined_call_operand.vmem [shape: f32[16,8], index: 7, kind: output, shape index: {}]  }
   0x1   :  { %v28_v0 = vld [vmem:[%s329_s1] sm:$0xf]  ;;  %v27_v2 = vld [vmem:[%s330_s0 + $0x8] sm:$0xff] }
   0x2   :  { %224 = vmatpush.xpose.msk.msra.mxu0 %vm33_vm0, %v28_v0  ;;  %233 = vmatpush.xpose.msk.msra.mxu3 %vm33_vm0, %v28_v0  ;;  %v26_v1 = vld [vmem:[%s330_s0] sm:$0xff] }
   0x3   :  { %v104_v3 = vld [vmem:[%s333_s3] sm:$0xf] }
   0x4   :  { %227 = vmatpush.xpose.msk.msra.mxu1 %vm109_vm1, %v104_v3  ;;  %v234_v4 = vld [vmem:[%s331_s2] ss:$0 sm:$0xff] }
   0x5   :  { %225 = vmatmul.msk.f32.vlgmr.msra.gmra.mxu0 %vm33_vm0, %v26_v1  ;;  %226 = vmatmul.msk.f32.vlgmr.msra.gmra.mxu3 %vm33_vm0, %v27_v2  ;;  %v180_v37 = vld [vmem:[%s335_s5] sm:$0xff] }
   0x6   :  { %230 = vmatpush.xpose.msk.msra.mxu2 %vm109_vm1, %v180_v37  ;;  %v235_v38 = vld [vmem:[%s332_s4] ss:$0 sm:$0xff] }
  0x82   :  { %v60_v5 = vpop.f32.mrf.mxu0 }
  0x83   :  { %v61_v6 = vadd.f32 %v234_v4, %v60_v5 }
  0x85   :  { %v66_v7 = vsub.f32 0.0, %v61_v6 }
  0x87   :  { %v68_v8 = vmul.f32 1.442695, %v66_v7  ;;  %v236_v7 = vld [vmem:[%s334_s6] ss:$0 sm:$0xff] }
  0x88   :  { %v63_v9 = vpop.f32.mrf.mxu3 }
  0x89   :  { %237 = vpow2.f32 %v68_v8  ;;  %v64_v10 = vadd.f32 %v234_v4, %v63_v9 }
  0x8b   :  { %v67_v11 = vsub.f32 0.0, %v64_v10 }
  0x8d   :  { %v70_v12 = vmul.f32 1.442695, %v67_v11 }
  0x8f   :  { %v238_v13 = vpop.eup %237  ;;  %239 = vpow2.f32 %v70_v12 }
  0x90   :  { %v72_v14 = vadd.f32 1.0, %v238_v13 }
  0x92   :  { %241 = vrcp.f32 %v72_v14  ;;  %v85_v20 = vand.u32 2147483648, %v72_v14  ;;  %v83_v22 = vand.u32 2147483647, %v72_v14  ;;  %vm79_vm3 = vweird.f32 %v72_v14 }
  0x94   :  { %v86_v26 = vor.u32 1.1754944e-38, %v85_v20  ;;  %vm84_vm5 = vcmp.eq.f32.partialorder %v83_v22, 8.507059e+37 }
  0x95   :  { %v240_v15 = vpop.eup %239 }
  0x96   :  { %v73_v16 = vadd.f32 1.0, %v240_v15 }
  0x98   :  { %v242_v17 = vpop.eup %241  ;;  %243 = vrcp.f32 %v73_v16  ;;  %v100_v31 = vand.u32 2147483648, %v73_v16  ;;  %vm94_vm7 = vweird.f32 %v73_v16  ;;  %v98_v33 = vand.u32 2147483647, %v73_v16 }
  0x99   :  { %v75_v18 = vmul.f32 %v242_v17, %v72_v14  ;;  %vm80_vm2 = vweird.f32 %v242_v17 }
  0x9a   :  { %vm81_vm4 = vmor %vm79_vm3, %vm80_vm2  ;;  %v101_v35 = vor.u32 1.1754944e-38, %v100_v31  ;;  %vm99_vm9 = vcmp.eq.f32.partialorder %v98_v33, 8.507059e+37  ;;  %vm217_vm3 = vcmask 64512  }
  0x9b   :  { %v76_v19 = vsub.f32 1.0, %v75_v18 }
  0x9d   :  { %v77_v21 = vmul.f32 %v242_v17, %v76_v19 }
  0x9e   :  { %v244_v23 = vpop.eup %243 }
  0x9f   :  { %v78_v24 = vadd.f32 %v242_v17, %v77_v21  ;;  %v90_v25 = vmul.f32 %v244_v23, %v73_v16  ;;  %vm95_vm6 = vweird.f32 %v244_v23 }
  0xa0   :  { %vm96_vm8 = vmor %vm94_vm7, %vm95_vm6 }
  0xa1   :  { %v82_v27 = vsel %vm81_vm4, %v242_v17, %v78_v24  ;;  %v91_v28 = vsub.f32 1.0, %v90_v25 }
  0xa2   :  { %v87_v29 = vsel %vm84_vm5, %v86_v26, %v82_v27 }
  0xa3   :  { %228 = vmatmul.msk.f32.vlgmr.msra.gmra.mxu1 %vm109_vm1, %v87_v29  ;;  %v92_v30 = vmul.f32 %v244_v23, %v91_v28 }
  0xa5   :  { %v93_v32 = vadd.f32 %v244_v23, %v92_v30 }
  0xa7   :  { %v97_v34 = vsel %vm96_vm8, %v244_v23, %v93_v32 }
  0xa8   :  { %v102_v36 = vsel %vm99_vm9, %v101_v35, %v97_v34 }
  0xab   :  { %229 = vmatmul.msk.f32.gmra.mxu1 %vm109_vm1, %v102_v36 }
 0x120   :  { %v136_v39 = vpop.f32.mrf.mxu1 }
 0x121   :  { %v137_v40 = vadd.f32 %v235_v38, %v136_v39 }
 0x123   :  { %v142_v41 = vsub.f32 0.0, %v137_v40 }
 0x125   :  { %v144_v42 = vmul.f32 1.442695, %v142_v41 }
 0x127   :  { %245 = vpow2.f32 %v144_v42 }
 0x128   :  { %v139_v43 = vpop.f32.mrf.mxu1 }
 0x129   :  { %v140_v44 = vadd.f32 %v235_v38, %v139_v43 }
 0x12b   :  { %v143_v45 = vsub.f32 0.0, %v140_v44 }
 0x12d   :  { %v246_v46 = vpop.eup %245  ;;  %v146_v47 = vmul.f32 1.442695, %v143_v45 }
 0x12e   :  { %v148_v48 = vadd.f32 1.0, %v246_v46 }
 0x12f   :  { %247 = vpow2.f32 %v146_v47 }
 0x130   :  { %249 = vrcp.f32 %v148_v48  ;;  %v161_v54 = vand.u32 2147483648, %v148_v48  ;;  %v159_v56 = vand.u32 2147483647, %v148_v48  ;;  %vm155_vm11 = vweird.f32 %v148_v48 }
 0x132   :  { %v162_v59 = vor.u32 1.1754944e-38, %v161_v54  ;;  %vm160_vm13 = vcmp.eq.f32.partialorder %v159_v56, 8.507059e+37 }
 0x135   :  { %v248_v49 = vpop.eup %247 }
 0x136   :  { %v250_v50 = vpop.eup %249  ;;  %v149_v51 = vadd.f32 1.0, %v248_v49 }
 0x137   :  { %v151_v52 = vmul.f32 %v250_v50, %v148_v48  ;;  %vm156_vm10 = vweird.f32 %v250_v50 }
 0x138   :  { %251 = vrcp.f32 %v149_v51  ;;  %vm157_vm12 = vmor %vm155_vm11, %vm156_vm10  ;;  %v176_v0 = vand.u32 2147483648, %v149_v51  ;;  %v174_v2 = vand.u32 2147483647, %v149_v51  ;;  %vm170_vm15 = vweird.f32 %v149_v51 }
 0x139   :  { %v152_v53 = vsub.f32 1.0, %v151_v52 }
 0x13a   :  { %v177_v4 = vor.u32 1.1754944e-38, %v176_v0  ;;  %vm175_vm2 = vcmp.eq.f32.partialorder %v174_v2, 8.507059e+37 }
 0x13b   :  { %v153_v55 = vmul.f32 %v250_v50, %v152_v53 }
 0x13d   :  { %v154_v57 = vadd.f32 %v250_v50, %v153_v55 }
 0x13e   :  { %v252_v58 = vpop.eup %251 }
 0x13f   :  { %v158_v60 = vsel %vm157_vm12, %v250_v50, %v154_v57  ;;  %v166_v61 = vmul.f32 %v252_v58, %v149_v51  ;;  %vm171_vm14 = vweird.f32 %v252_v58 }
 0x140   :  { %v163_v62 = vsel %vm160_vm13, %v162_v59, %v158_v60  ;;  %vm172_vm0 = vmor %vm170_vm15, %vm171_vm14 }
 0x141   :  { %231 = vmatmul.msk.f32.vlgmr.msra.gmra.mxu2 %vm109_vm1, %v163_v62  ;;  %v167_v63 = vsub.f32 1.0, %v166_v61 }
 0x143   :  { %v168_v1 = vmul.f32 %v252_v58, %v167_v63 }
 0x145   :  { %v169_v3 = vadd.f32 %v252_v58, %v168_v1 }
 0x147   :  { %v173_v5 = vsel %vm172_vm0, %v252_v58, %v169_v3 }
 0x148   :  { %v178_v6 = vsel %vm175_vm2, %v177_v4, %v173_v5 }
 0x149   :  { %232 = vmatmul.msk.f32.gmra.mxu2 %vm109_vm1, %v178_v6 }
 0x1c4   :  { %v211_v8 = vpop.f32.mrf.mxu2 }
 0x1c5   :  { %v212_v9 = vadd.f32 %v236_v7, %v211_v8 }
 0x1c7   :  { %218 = vst.msk [vmem:[%s336_s7] sm:$0xff] %vm217_vm3, %v212_v9 }
 0x1cc   :  { %v214_v10 = vpop.f32.mrf.mxu2 }
 0x1cd   :  { %v215_v11 = vadd.f32 %v236_v7, %v214_v10 }
 0x1cf   :  { %219 = vst.msk [vmem:[%s336_s7 + $0x8] sm:$0xff] %vm217_vm3, %v215_v11 }

</bundles_post_ra>
